<compile_context>
chip_gen: v6e
topology: v6e:2x2x1
jax: 0.10.0
libtpu: 0.0.40
codegen_flags: <defaults>
</compile_context>

<pallas_src>
import math
import functools

import jax
import jax.numpy as jnp
from jax.experimental import pallas as pl
from jax.experimental.pallas import tpu as pltpu

MIN_NORM = 1e-15        # norm clamp (HGCN convention)
ATANH_EPS = 1e-7        # artanh argument clamp representable in float32
MAX_NORM = 1e6          # manifold.max_norm used by the HypAct clamp


def _hyp_act_kernel(x_ref, o_ref, *, c_in, c_out):
    """One row-tile of HypAct: logmap0(c_in) -> ReLU -> clamp -> expmap0(c_out)."""
    x = x_ref[...].astype(jnp.float32)                                   # (tile, d)

    sqrt_ci = math.sqrt(c_in)
    sqrt_co = math.sqrt(c_out)

    # ---- logmap0(x, c_in):  x / (sqrt(c_in) * ||x||) * artanh(sqrt(c_in) * ||x||) ----
    x_norm = jnp.maximum(
        jnp.sqrt(jnp.sum(x * x, axis=-1, keepdims=True)), MIN_NORM)      # (tile, 1)
    z = jnp.minimum(sqrt_ci * x_norm, 1.0 - ATANH_EPS)                   # z >= 0
    # artanh(z) = 0.5 * log((1+z)/(1-z)); exact divide on the tiny (tile, 1) column.
    artanh_z = 0.5 * jnp.log((1.0 + z) / (1.0 - z))
    log_scale = artanh_z / (sqrt_ci * x_norm)                            # (tile, 1)
    xt = x * log_scale

    # ---- act = ReLU, then clamp(max=max_norm); proj_tan0 is identity on the ball ----
    xt = jnp.minimum(jnp.maximum(xt, 0.0), MAX_NORM)

    # ---- expmap0(xt, c_out):  tanh(sqrt(c_out) * ||u||) * u / (sqrt(c_out) * ||u||) ----
    u_norm = jnp.maximum(
        jnp.sqrt(jnp.sum(xt * xt, axis=-1, keepdims=True)), MIN_NORM)    # (tile, 1)
    exp_scale = jnp.tanh(sqrt_co * u_norm) / (sqrt_co * u_norm)          # (tile, 1)
    out = xt * exp_scale

    o_ref[...] = out.astype(o_ref.dtype)


def _round_up(a, m):
    return -(-a // m) * m


def _round_down(a, m):
    return (a // m) * m


def _pick_row_tile(n, d, itemsize, target_block_bytes):
    """Row tile: multiple of 8, ~target_block_bytes per block, >=2 grid steps when possible."""
    bytes_per_row = max(1, d * itemsize)
    tile = max(8, _round_down(target_block_bytes // bytes_per_row, 8))
    n8 = _round_up(n, 8)
    tile = min(tile, n8)
    if n8 >= 16:
        # Keep at least two grid steps so both v7x TensorCores get work
        # (dimension_semantics=("parallel",) shards the row grid across cores).
        tile = min(tile, max(8, _round_up(n8 // 2, 8)))
    return int(tile)


def hyp_act(x, *, c_in=1.0, c_out=1.0, target_block_bytes=2 * 1024 * 1024):
    """HypAct forward. x: (N, D) points on the Poincare ball of curvature c_in.

    Dtype-agnostic (f32 or bf16 in/out; math in f32 inside the kernel).
    target_block_bytes sizes the row tile (~2 MiB works on v5e/v6e; raise to
    4-8 MiB on v7x if profiling shows per-step overhead).
    """
    n, d = x.shape
    tile = _pick_row_tile(n, d, x.dtype.itemsize, target_block_bytes)
    grid = (pl.cdiv(n, tile),)

    kernel = functools.partial(_hyp_act_kernel, c_in=float(c_in), c_out=float(c_out))
    return pl.pallas_call(
        kernel,
        out_shape=jax.ShapeDtypeStruct((n, d), x.dtype),
        grid=grid,
        in_specs=[pl.BlockSpec((tile, d), lambda i: (i, 0))],
        out_specs=pl.BlockSpec((tile, d), lambda i: (i, 0)),
        compiler_params=pltpu.CompilerParams(
            dimension_semantics=("parallel",),
            vmem_limit_bytes=32 * 1024 * 1024,
        ),
    )(x)


def _reference_hyp_act(x, c_in, c_out):
    """Pure-JAX reference (Poincare ball, act=ReLU, max_norm clamp). f32 math."""
    x = x.astype(jnp.float32)
    sqrt_ci = jnp.sqrt(jnp.float32(c_in))
    sqrt_co = jnp.sqrt(jnp.float32(c_out))
    x_norm = jnp.maximum(jnp.sqrt(jnp.sum(x * x, axis=-1, keepdims=True)), MIN_NORM)
    z = jnp.clip(sqrt_ci * x_norm, -1.0 + ATANH_EPS, 1.0 - ATANH_EPS)
    artanh_z = 0.5 * jnp.log((1.0 + z) / (1.0 - z))
    xt = x / x_norm / sqrt_ci * artanh_z                      # logmap0(x, c_in)
    xt = jnp.minimum(jnp.maximum(xt, 0.0), MAX_NORM)          # ReLU + clamp(max)
    u_norm = jnp.maximum(jnp.sqrt(jnp.sum(xt * xt, axis=-1, keepdims=True)), MIN_NORM)
    return jnp.tanh(sqrt_co * u_norm) * xt / (sqrt_co * u_norm)   # expmap0(xt, c_out)


if __name__ == "__main__":
    C_IN, C_OUT = 1.0, 0.7
    key = jax.random.PRNGKey(0)
    k1, k2, k3 = jax.random.split(key, 3)

    # Case 1: small node-feature batch (hidden=32), float32.
    N, D = 64, 32
    x = 0.05 * jax.random.normal(k1, (N, D), jnp.float32)
    out = jax.block_until_ready(hyp_act(x, c_in=C_IN, c_out=C_OUT))
    ref = _reference_hyp_act(x, C_IN, C_OUT)
    assert out.shape == (N, D)
    assert bool(jnp.all(jnp.isfinite(out)))
    assert bool(jnp.allclose(out, ref, rtol=1e-4, atol=1e-6))

    # Case 2: ragged shapes (N not a multiple of 8, D not a multiple of 128):
    # exercises the masked partial row-block and lane-masked reduction.
    N2, D2 = 70, 48
    x2 = 0.05 * jax.random.normal(k2, (N2, D2), jnp.float32)
    out2 = jax.block_until_ready(hyp_act(x2, c_in=C_IN, c_out=C_OUT))
    ref2 = _reference_hyp_act(x2, C_IN, C_OUT)
    assert out2.shape == (N2, D2)
    assert bool(jnp.all(jnp.isfinite(out2)))
    assert bool(jnp.allclose(out2, ref2, rtol=1e-4, atol=1e-6))

    # Case 3: bf16 interface (halves HBM traffic on this memory-bound op).
    x3 = (0.05 * jax.random.normal(k3, (N, D), jnp.float32)).astype(jnp.bfloat16)
    out3 = jax.block_until_ready(hyp_act(x3, c_in=C_IN, c_out=C_OUT))
    ref3 = _reference_hyp_act(x3, C_IN, C_OUT)
    assert out3.shape == (N, D) and out3.dtype == jnp.bfloat16
    assert bool(jnp.all(jnp.isfinite(out3.astype(jnp.float32))))
    assert bool(jnp.allclose(out3.astype(jnp.float32), ref3, rtol=5e-2, atol=1e-3))

    print("KERNEL_OK")
</pallas_src>

<mosaic_0001>
module attributes {stable_mosaic.version = 11 : i64} {
  func.func @_hyp_act_kernel(%arg0: i32, %arg1: memref<32x32xf32, #tpu.memory_space<vmem>>, %arg2: memref<32x32xf32, #tpu.memory_space<vmem>>) attributes {dimension_semantics = [#tpu.dimension_semantics<parallel>], iteration_bounds = array<i64: 2>, scalar_prefetch = 0 : i64, scratch_operands = 0 : i64, tpu.core_type = #tpu.core_type<tc>, window_params = [{transform_indices = @transform_0, window_bounds = array<i64: 32, 32>}, {transform_indices = @transform_1, window_bounds = array<i64: 32, 32>}]} {
    %c0 = arith.constant 0 : index
    %c0_0 = arith.constant 0 : index
    %0 = vector.load %arg1[%c0, %c0_0] : memref<32x32xf32, #tpu.memory_space<vmem>>, vector<32x32xf32>
    %1 = arith.mulf %0, %0 : vector<32x32xf32>
    %cst = arith.constant dense<0.000000e+00> : vector<32xf32>
    %2 = vector.multi_reduction <add>, %1, %cst [1] : vector<32x32xf32> to vector<32xf32>
    %3 = vector.shape_cast %2 : vector<32xf32> to vector<32x1xf32>
    %4 = math.sqrt %3 : vector<32x1xf32>
    %cst_1 = arith.constant 1.000000e-15 : f32
    %5 = vector.broadcast %cst_1 : f32 to vector<32x1xf32>
    %6 = arith.maximumf %4, %5 : vector<32x1xf32>
    %cst_2 = arith.constant 1.000000e+00 : f32
    %7 = vector.broadcast %cst_2 : f32 to vector<32x1xf32>
    %8 = arith.mulf %7, %6 : vector<32x1xf32>
    %cst_3 = arith.constant 0.99999988 : f32
    %9 = vector.broadcast %cst_3 : f32 to vector<32x1xf32>
    %10 = arith.minimumf %8, %9 : vector<32x1xf32>
    %cst_4 = arith.constant 1.000000e+00 : f32
    %11 = vector.broadcast %cst_4 : f32 to vector<32x1xf32>
    %12 = arith.addf %11, %10 : vector<32x1xf32>
    %cst_5 = arith.constant 1.000000e+00 : f32
    %13 = vector.broadcast %cst_5 : f32 to vector<32x1xf32>
    %14 = arith.subf %13, %10 : vector<32x1xf32>
    %15 = arith.divf %12, %14 : vector<32x1xf32>
    %16 = math.log %15 : vector<32x1xf32>
    %cst_6 = arith.constant 5.000000e-01 : f32
    %17 = vector.broadcast %cst_6 : f32 to vector<32x1xf32>
    %18 = arith.mulf %17, %16 : vector<32x1xf32>
    %cst_7 = arith.constant 1.000000e+00 : f32
    %19 = vector.broadcast %cst_7 : f32 to vector<32x1xf32>
    %20 = arith.mulf %19, %6 : vector<32x1xf32>
    %21 = arith.divf %18, %20 : vector<32x1xf32>
    %22 = vector.broadcast %21 : vector<32x1xf32> to vector<32x32xf32>
    %23 = arith.mulf %0, %22 : vector<32x32xf32>
    %cst_8 = arith.constant 0.000000e+00 : f32
    %24 = vector.broadcast %cst_8 : f32 to vector<32x32xf32>
    %25 = arith.maximumf %23, %24 : vector<32x32xf32>
    %cst_9 = arith.constant 1.000000e+06 : f32
    %26 = vector.broadcast %cst_9 : f32 to vector<32x32xf32>
    %27 = arith.minimumf %25, %26 : vector<32x32xf32>
    %28 = arith.mulf %27, %27 : vector<32x32xf32>
    %cst_10 = arith.constant dense<0.000000e+00> : vector<32xf32>
    %29 = vector.multi_reduction <add>, %28, %cst_10 [1] : vector<32x32xf32> to vector<32xf32>
    %30 = vector.shape_cast %29 : vector<32xf32> to vector<32x1xf32>
    %31 = math.sqrt %30 : vector<32x1xf32>
    %cst_11 = arith.constant 1.000000e-15 : f32
    %32 = vector.broadcast %cst_11 : f32 to vector<32x1xf32>
    %33 = arith.maximumf %31, %32 : vector<32x1xf32>
    %cst_12 = arith.constant 8.366600e-01 : f32
    %34 = vector.broadcast %cst_12 : f32 to vector<32x1xf32>
    %35 = arith.mulf %34, %33 : vector<32x1xf32>
    %36 = math.tanh %35 : vector<32x1xf32>
    %cst_13 = arith.constant 8.366600e-01 : f32
    %37 = vector.broadcast %cst_13 : f32 to vector<32x1xf32>
    %38 = arith.mulf %37, %33 : vector<32x1xf32>
    %39 = arith.divf %36, %38 : vector<32x1xf32>
    %40 = vector.broadcast %39 : vector<32x1xf32> to vector<32x32xf32>
    %41 = arith.mulf %27, %40 : vector<32x32xf32>
    %c0_14 = arith.constant 0 : index
    %c0_15 = arith.constant 0 : index
    %42 = vector.load %arg2[%c0_14, %c0_15] : memref<32x32xf32, #tpu.memory_space<vmem>>, vector<32x32xf32>
    tpu.vector_store %arg2[%c0_14, %c0_15], %41 {strides = array<i32>} : memref<32x32xf32, #tpu.memory_space<vmem>>, vector<32x32xf32>,
    return
  }
  func.func @transform_0(%arg0: i32) -> (i32, i32) {
    %c0_i32 = arith.constant 0 : i32
    %c0_i32_0 = arith.constant 0 : i32
    return %arg0, %c0_i32 : i32, i32
  }
  func.func @transform_1(%arg0: i32) -> (i32, i32) {
    %c0_i32 = arith.constant 0 : i32
    %c0_i32_0 = arith.constant 0 : i32
    return %arg0, %c0_i32 : i32, i32
  }
}

</mosaic_0001>

<bundles_post_ra>
// kernel: tpu_custom_call.1
= control target key start
LH: loop header
LB: loop body
LE: loop exit
PB: predicated region body
PF: predicated region fallthrough
CT: control target
= control target key end

     0   :  { %s446_s6 = smov 0   ;;  %s522_s0 = inlined_call_operand.vmem [shape: f32[64,32], index: 0, kind: input, shape index: {}]   ;;  %s523_s1 = inlined_call_operand.vmem [shape: f32[64,32], index: 1, kind: output, shape index: {}]  }
   0x1 LB: > { %s353_s7 = sadd.s32 4294967295, %s434_s6   ;;  %p357_p0 = scmp.ge.s32.totalorder %s434_s6, 1  ;;  %s434_s6 = sphi %s446_s6, %s11_s6  }
   0x2   : > { %p88_p1 = scmp.lt.s32.totalorder %s434_s6, 3 }
   0x4   : > { %p89_p2 = pnand %p357_p0, %p88_p1 }
   0x5   : > { %s358_s8 = sshll.u32 (!%p89_p2), %s353_s7, 2 }
   0x6   : > { %92 = sbr.rel (%p89_p2) target bundleno = 414 (0x19e), region = 24  ;;  %p109_p3 = scmp.lt.s32.totalorder (!%p89_p2), %s358_s8, 7 }
   0xb   : > { %s525_s8 = smov (!%p109_p3, %s358_s8), 7  ;;  %vm128_vm0 = vcmask 261120  }
   0xc   : > { %s359_s9 = sshll.u32 %s525_s8, 3 }
   0xd   : > { %s112_s12 = scalar_lea.vmem %s522_s0, %s359_s9  ;;  %s118_s15 = scalar_lea.vmem %s523_s1, %s359_s9 }
   0xe   : > { %v462_v0 = vld [vmem:[%s112_s12 + $0x10] sm:$0xff]  ;;  %v464_v1 = vld [vmem:[%s112_s12] sm:$0xff]  ;;  %v466_v2 = vld [vmem:[%s112_s12 + $0x18] sm:$0xff] }
   0xf   : > { %v126_v3 = vmul.f32 %v462_v0, %v462_v0  ;;  %v124_v4 = vmul.f32 %v464_v1, %v464_v1  ;;  %v127_v5 = vmul.f32 %v466_v2, %v466_v2  ;;  %v474_v6 = vld [vmem:[%s112_s12 + $0x8] sm:$0xff] }
  0x10   : > { %v125_v7 = vmul.f32 %v474_v6, %v474_v6 }
  0x11   : > { %v135_v8 = vsel %vm128_vm0, %v126_v3, 0.0  ;;  %v129_v9 = vsel %vm128_vm0, %v124_v4, 0.0  ;;  %v138_v10 = vsel %vm128_vm0, %v127_v5, 0.0 }
  0x12   : > { %136 = vadd.xlane.f32.xlu1 %v135_v8  ;;  %130 = vadd.xlane.f32.xlu0 %v129_v9  ;;  %v132_v11 = vsel %vm128_vm0, %v125_v7, 0.0 }
  0x16   : > { %139 = vadd.xlane.f32.xlu1 %v138_v10  ;;  %133 = vadd.xlane.f32.xlu0 %v132_v11 }
  0x9b   : > { %v137_v12 = vpop.xlane.xlu1 %136  ;;  %v131_v13 = vpop.xlane.xlu0 %130 }
  0x9c   : > { %372 = vrsqrt.f32 %v137_v12  ;;  %vm157_vm1 = vcmp.eq.f32.partialorder %v137_v12, inf  ;;  %v160_v19 = vand.u32 2147483648, %v137_v12  ;;  %vm159_vm2 = vcmp.eq.f32.partialorder %v137_v12, 0.0 }
  0x9d   : > { %374 = vrsqrt.f32 %v131_v13  ;;  %vm143_vm3 = vcmp.eq.f32.partialorder %v131_v13, inf  ;;  %v146_v22 = vand.u32 2147483648, %v131_v13  ;;  %vm145_vm4 = vcmp.eq.f32.partialorder %v131_v13, 0.0 }
  0x9f   : > { %v140_v14 = vpop.xlane.xlu1 %139  ;;  %v134_v15 = vpop.xlane.xlu0 %133 }
  0xa0   : > { %376 = vrsqrt.f32 %v140_v14  ;;  %vm164_vm5 = vcmp.eq.f32.partialorder %v140_v14, inf  ;;  %vm166_vm6 = vcmp.eq.f32.partialorder %v140_v14, 0.0  ;;  %v167_v31 = vand.u32 2147483648, %v140_v14 }
  0xa1   : > { %378 = vrsqrt.f32 %v134_v15  ;;  %vm150_vm7 = vcmp.eq.f32.partialorder %v134_v15, inf  ;;  %v153_v35 = vand.u32 2147483648, %v134_v15  ;;  %vm152_vm8 = vcmp.eq.f32.partialorder %v134_v15, 0.0 }
  0xa9   : > { %v373_v16 = vpop.eup %372 }
  0xaa   : > { %v375_v17 = vpop.eup %374  ;;  %v156_v18 = vmul.f32 %v373_v16, %v137_v12 }
  0xab   : > { %v142_v20 = vmul.f32 %v375_v17, %v131_v13 }
  0xac   : > { %v158_v21 = vsel %vm157_vm1, %v137_v12, %v156_v18 }
  0xad   : > { %v377_v23 = vpop.eup %376  ;;  %v161_v24 = vsel %vm159_vm2, %v160_v19, %v158_v21  ;;  %v144_v25 = vsel %vm143_vm3, %v131_v13, %v142_v20 }
  0xae   : > { %v379_v26 = vpop.eup %378  ;;  %v171_v27 = vmax.f32 %v161_v24, 1e-15  ;;  %v147_v28 = vsel %vm145_vm4, %v146_v22, %v144_v25  ;;  %v163_v29 = vmul.f32 %v377_v23, %v140_v14 }
  0xaf   : > { %v169_v30 = vmax.f32 %v147_v28, 1e-15  ;;  %v149_v32 = vmul.f32 %v379_v26, %v134_v15 }
  0xb0   : > { %v175_v33 = vmin.f32 %v171_v27, 0.9999999  ;;  %v165_v34 = vsel %vm164_vm5, %v140_v14, %v163_v29 }
  0xb1   : > { %v173_v36 = vmin.f32 %v169_v30, 0.9999999  ;;  %v168_v37 = vsel %vm166_vm6, %v167_v31, %v165_v34  ;;  %v151_v38 = vsel %vm150_vm7, %v134_v15, %v149_v32 }
  0xb2   : > { %v183_v39 = vsub.f32 1.0, %v175_v33  ;;  %v172_v40 = vmax.f32 %v168_v37, 1e-15  ;;  %v154_v41 = vsel %vm152_vm8, %v153_v35, %v151_v38  ;;  %v179_v48 = vadd.f32 1.0, %v175_v33 }
  0xb3   : > { %v181_v42 = vsub.f32 1.0, %v173_v36  ;;  %v170_v43 = vmax.f32 %v154_v41, 1e-15  ;;  %v177_v50 = vadd.f32 1.0, %v173_v36 }
  0xb4   : > { %380 = vrcp.f32 %v183_v39  ;;  %v176_v44 = vmin.f32 %v172_v40, 0.9999999 }
  0xb5   : > { %382 = vrcp.f32 %v181_v42  ;;  %v174_v45 = vmin.f32 %v170_v43, 0.9999999 }
  0xb6   : > { %v184_v46 = vsub.f32 1.0, %v176_v44  ;;  %v180_v54 = vadd.f32 1.0, %v176_v44 }
  0xb7   : > { %v182_v47 = vsub.f32 1.0, %v174_v45  ;;  %v178_v56 = vadd.f32 1.0, %v174_v45 }
  0xb8   : > { %384 = vrcp.f32 %v184_v46 }
  0xb9   : > { %386 = vrcp.f32 %v182_v47 }
  0xc1   : > { %v381_v49 = vpop.eup %380 }
  0xc2   : > { %v383_v51 = vpop.eup %382  ;;  %v190_v52 = vmul.f32 %v381_v49, %v179_v48 }
  0xc3   : > { %v186_v53 = vmul.f32 %v383_v51, %v177_v50 }
  0xc4   : > { %388 = vlog2.f32 %v190_v52 }
  0xc5   : > { %v385_v55 = vpop.eup %384  ;;  %390 = vlog2.f32 %v186_v53 }
  0xc6   : > { %v387_v57 = vpop.eup %386  ;;  %392 = vrcp.f32 %v171_v27  ;;  %v192_v58 = vmul.f32 %v385_v55, %v180_v54 }
  0xc7   : > { %394 = vrcp.f32 %v169_v30  ;;  %v188_v59 = vmul.f32 %v387_v57, %v178_v56 }
  0xc8   : > { %396 = vlog2.f32 %v192_v58 }
  0xc9   : > { %398 = vlog2.f32 %v188_v59 }
  0xca   : > { %400 = vrcp.f32 %v172_v40 }
  0xcb   : > { %402 = vrcp.f32 %v170_v43 }
  0xd1   : > { %v389_v60 = vpop.eup %388 }
  0xd2   : > { %v391_v61 = vpop.eup %390  ;;  %v198_v62 = vmul.f32 0.6931472, %v389_v60 }
  0xd3   : > { %v393_v63 = vpop.eup %392  ;;  %v194_v3 = vmul.f32 0.6931472, %v391_v61 }
  0xd4   : > { %v395_v4 = vpop.eup %394  ;;  %v203_v5 = vmul.f32 0.5, %v198_v62 }
  0xd5   : > { %v397_v7 = vpop.eup %396  ;;  %v201_v8 = vmul.f32 0.5, %v194_v3 }
  0xd6   : > { %v399_v9 = vpop.eup %398  ;;  %v210_v10 = vmul.f32 %v393_v63, %v203_v5  ;;  %v200_v11 = vmul.f32 0.6931472, %v397_v7 }
  0xd7   : > { %v206_v12 = vmul.f32 %v395_v4, %v201_v8  ;;  %v196_v13 = vmul.f32 0.6931472, %v399_v9  ;;  %v401_v16 = vpop.eup %400 }
  0xd8   : > { %v215_v14 = vmul.f32 %v210_v10, %v462_v0  ;;  %v204_v15 = vmul.f32 0.5, %v200_v11  ;;  %v403_v19 = vpop.eup %402 }
  0xd9   : > { %v213_v17 = vmul.f32 %v206_v12, %v464_v1  ;;  %v202_v18 = vmul.f32 0.5, %v196_v13 }
  0xda   : > { %v219_v20 = vmax.f32 %v215_v14, 0.0  ;;  %v212_v21 = vmul.f32 %v401_v16, %v204_v15 }
  0xdb   : > { %v217_v22 = vmax.f32 %v213_v17, 0.0  ;;  %v208_v23 = vmul.f32 %v403_v19, %v202_v18 }
  0xdc   : > { %v216_v24 = vmul.f32 %v212_v21, %v466_v2  ;;  %v487_v26 = vmin.f32 %v219_v20, 1000000.0 }
  0xdd   : > { %v485_v25 = vmin.f32 %v217_v22, 1000000.0  ;;  %v214_v27 = vmul.f32 %v208_v23, %v474_v6 }
  0xde   : > { %v220_v28 = vmax.f32 %v216_v24, 0.0  ;;  %v227_v30 = vmul.f32 %v487_v26, %v487_v26 }
  0xdf   : > { %v225_v0 = vmul.f32 %v485_v25, %v485_v25  ;;  %v218_v29 = vmax.f32 %v214_v27, 0.0 }
  0xe0   : > { %v497_v32 = vmin.f32 %v220_v28, 1000000.0  ;;  %v235_v6 = vsel %vm128_vm0, %v227_v30, 0.0 }
  0xe1   : > { %v229_v1 = vsel %vm128_vm0, %v225_v0, 0.0  ;;  %v495_v31 = vmin.f32 %v218_v29, 1000000.0 }
  0xe2   : > { %230 = vadd.xlane.f32.xlu0 %v229_v1  ;;  %v228_v34 = vmul.f32 %v497_v32, %v497_v32 }
  0xe3   : > { %v226_v2 = vmul.f32 %v495_v31, %v495_v31 }
  0xe4   : > { %v238_v35 = vsel %vm128_vm0, %v228_v34, 0.0 }
  0xe5   : > { %v232_v33 = vsel %vm128_vm0, %v226_v2, 0.0 }
  0xe6   : > { %236 = vadd.xlane.f32.xlu0 %v235_v6  ;;  %233 = vadd.xlane.f32.xlu1 %v232_v33 }
  0xea   : > { %239 = vadd.xlane.f32.xlu1 %v238_v35 }
 0x16b   : > { %v231_v36 = vpop.xlane.xlu0 %230 }
 0x16c   : > { %404 = vrsqrt.f32 %v231_v36  ;;  %vm243_vm9 = vcmp.eq.f32.partialorder %v231_v36, inf  ;;  %v246_v42 = vand.u32 2147483648, %v231_v36  ;;  %vm245_vm10 = vcmp.eq.f32.partialorder %v231_v36, 0.0 }
 0x16f   : > { %v234_v37 = vpop.xlane.xlu1 %233  ;;  %v237_v38 = vpop.xlane.xlu0 %236 }
 0x170   : > { %406 = vrsqrt.f32 %v234_v37  ;;  %vm250_vm11 = vcmp.eq.f32.partialorder %v234_v37, inf  ;;  %vm252_vm12 = vcmp.eq.f32.partialorder %v234_v37, 0.0  ;;  %v253_v49 = vand.u32 2147483648, %v234_v37 }
 0x171   : > { %408 = vrsqrt.f32 %v237_v38  ;;  %vm257_vm13 = vcmp.eq.f32.partialorder %v237_v38, inf  ;;  %v260_v53 = vand.u32 2147483648, %v237_v38  ;;  %vm259_vm14 = vcmp.eq.f32.partialorder %v237_v38, 0.0 }
 0x173   : > { %v240_v39 = vpop.xlane.xlu1 %239 }
 0x174   : > { %410 = vrsqrt.f32 %v240_v39  ;;  %vm264_vm15 = vcmp.eq.f32.partialorder %v240_v39, inf  ;;  %v267_v61 = vand.u32 2147483648, %v240_v39  ;;  %vm266_vm1 = vcmp.eq.f32.partialorder %v240_v39, 0.0 }
 0x179   : > { %v405_v40 = vpop.eup %404 }
 0x17a   : > { %v242_v41 = vmul.f32 %v405_v40, %v231_v36 }
 0x17c   : > { %v244_v43 = vsel %vm243_vm9, %v231_v36, %v242_v41 }
 0x17d   : > { %v407_v44 = vpop.eup %406  ;;  %v247_v45 = vsel %vm245_vm10, %v246_v42, %v244_v43 }
 0x17e   : > { %v409_v46 = vpop.eup %408  ;;  %v269_v47 = vmax.f32 %v247_v45, 1e-15  ;;  %v249_v48 = vmul.f32 %v407_v44, %v234_v37 }
 0x17f   : > { %v256_v50 = vmul.f32 %v409_v46, %v237_v38 }
 0x180   : > { %v273_v51 = vmul.f32 0.83666, %v269_v47  ;;  %v251_v52 = vsel %vm250_vm11, %v234_v37, %v249_v48 }
 0x181   : > { %v411_v54 = vpop.eup %410  ;;  %v254_v55 = vsel %vm252_vm12, %v253_v49, %v251_v52  ;;  %v258_v56 = vsel %vm257_vm13, %v237_v38, %v256_v50 }
 0x182   : > { %412 = vtanh.f32 %v273_v51  ;;  %v270_v57 = vmax.f32 %v254_v55, 1e-15  ;;  %v261_v58 = vsel %vm259_vm14, %v260_v53, %v258_v56  ;;  %v263_v59 = vmul.f32 %v411_v54, %v240_v39 }
 0x183   : > { %414 = vrcp.f32 %v273_v51  ;;  %v271_v60 = vmax.f32 %v261_v58, 1e-15 }
 0x184   : > { %v274_v62 = vmul.f32 0.83666, %v270_v57  ;;  %v265_v63 = vsel %vm264_vm15, %v240_v39, %v263_v59 }
 0x185   : > { %v275_v3 = vmul.f32 0.83666, %v271_v60  ;;  %v268_v4 = vsel %vm266_vm1, %v267_v61, %v265_v63 }
 0x186   : > { %416 = vtanh.f32 %v274_v62  ;;  %v272_v5 = vmax.f32 %v268_v4, 1e-15 }
 0x187   : > { %418 = vrcp.f32 %v274_v62 }
 0x188   : > { %420 = vtanh.f32 %v275_v3  ;;  %v276_v7 = vmul.f32 0.83666, %v272_v5 }
 0x189   : > { %422 = vrcp.f32 %v275_v3 }
 0x18a   : > { %424 = vtanh.f32 %v276_v7 }
 0x18b   : > { %426 = vrcp.f32 %v276_v7 }
 0x18f   : > { %v413_v8 = vpop.eup %412 }
 0x190   : > { %v415_v9 = vpop.eup %414 }
 0x191   : > { %v282_v10 = vmul.f32 %v415_v9, %v413_v8 }
 0x193   : > { %v417_v11 = vpop.eup %416  ;;  %v289_v12 = vmul.f32 %v282_v10, %v485_v25 }
 0x194   : > { %v419_v13 = vpop.eup %418 }
 0x195   : > { %v421_v14 = vpop.eup %420  ;;  %293 = vst.msk [vmem:[%s118_s15] sm:$0xff] %vm128_vm0, %v289_v12  ;;  %v284_v15 = vmul.f32 %v419_v13, %v417_v11 }
 0x196   : > { %v423_v16 = vpop.eup %422 }
 0x197   : > { %v425_v17 = vpop.eup %424  ;;  %v290_v18 = vmul.f32 %v284_v15, %v495_v31  ;;  %v286_v19 = vmul.f32 %v423_v16, %v421_v14 }
 0x198   : > { %v427_v20 = vpop.eup %426 }
 0x199   : > { %294 = vst.msk [vmem:[%s118_s15 + $0x8] sm:$0xff] %vm128_vm0, %v290_v18  ;;  %v291_v21 = vmul.f32 %v286_v19, %v487_v26  ;;  %v288_v22 = vmul.f32 %v427_v20, %v425_v17 }
 0x19b   : > { %295 = vst.msk [vmem:[%s118_s15 + $0x10] sm:$0xff] %vm128_vm0, %v291_v21  ;;  %v292_v23 = vmul.f32 %v288_v22, %v497_v32 }
 0x19d   : > { %296 = vst.msk [vmem:[%s118_s15 + $0x18] sm:$0xff] %vm128_vm0, %v292_v23 }
 0x19e PF: > { %s11_s6 = sadd.s32 1, %s434_s6  }
 0x19f   : > { %p8_p4 = scmp.ge.s32.totalorder %s11_s6, 4  }
 0x1a1   :  { %10 = sbr.rel (!%p8_p4) target bundleno = 1 (0x1), region = 54 }

</bundles_post_ra>
